<compile_context>
chip_gen: v5e
topology: v5e:2x2
jax: 0.10.0
libtpu: 0.0.40
codegen_flags: <defaults>
</compile_context>

<pallas_src>
import jax
import jax.numpy as jnp
from jax.experimental import pallas as pl
from jax.experimental.pallas import tpu as pltpu


def _tpu_config():
    """Generation-aware budgets via the device kind string (robust fallback)."""
    kind = ""
    try:
        kind = (getattr(jax.devices()[0], "device_kind", "") or "").lower()
    except Exception:
        pass
    is_v7 = "v7" in kind
    has_bf16_eup = ("v6" in kind) or is_v7          # v5e (and unknown) stay f32
    if is_v7:                                        # 64 MiB physical VMEM
        ws_budget, vmem_cap = 36 << 20, 48 << 20
    elif ("v5" in kind) or ("v6" in kind):           # 128 MiB physical VMEM
        ws_budget, vmem_cap = 80 << 20, 112 << 20
    else:                                            # unknown: stay conservative
        ws_budget, vmem_cap = 48 << 20, 64 << 20
    return has_bf16_eup, ws_budget, vmem_cap


def _pick_block_rows(batch_size: int, num_classes: int, itemsize: int,
                     ws_budget: int) -> int:
    # Per-step working set ~= 2 double-buffered native (TB,C) tiles plus ~2
    # f32 element-wise temporaries (cast/exp) of the same extent.
    per_elem = 2 * itemsize + 8
    tb = ws_budget // max(1, num_classes * per_elem)
    tb = max(8, (tb // 8) * 8)                       # sublane-aligned
    if tb >= batch_size:
        return batch_size                            # single full-extent tile
    return tb


def _make_ce_kernel(*, batch_size: int, block_rows: int,
                    labels_resident: bool, use_bf16_exp: bool):
    mask_rows = (batch_size % block_rows) != 0       # compile-time decision

    def kernel(logits_ref, labels_ref, out_ref):
        i = pl.program_id(0)

        x = logits_ref[...]                          # (TB, C) native dtype
        tb, c = x.shape

        if labels_resident:
            start = i * block_rows
            if block_rows % 8 == 0:
                start = pl.multiple_of(start, block_rows)
            labels = labels_ref[pl.ds(start, block_rows), :]   # (TB, 1) int32
        else:
            labels = labels_ref[...]                            # (TB, 1) int32

        # Row max in native dtype (exact for bf16/f32); upcast only the (TB,1).
        m = jnp.max(x, axis=-1, keepdims=True)
        m_f32 = m.astype(jnp.float32)

        # Numerically stable sum of exp along the class (lane) axis.
        if use_bf16_exp and x.dtype == jnp.bfloat16:
            e = jnp.exp(x - m)                       # bf16 EUP (v6e/v7x); args <= 0
            sum_exp = jnp.sum(e.astype(jnp.float32), axis=-1, keepdims=True)
        else:
            sum_exp = jnp.sum(jnp.exp(x.astype(jnp.float32) - m_f32),
                              axis=-1, keepdims=True)
        lse = m_f32 + jnp.log(sum_exp)               # (TB, 1) f32

        # Label gather: (1,C) iota compare broadcasts against (TB,1) labels.
        # NOTE: out-of-range labels contribute 0 (PyTorch would raise).
        class_ids = jax.lax.broadcasted_iota(jnp.int32, (1, c), dimension=1)
        sel = jnp.where(class_ids == labels, x, jnp.zeros((), x.dtype))
        label_logit = jnp.sum(sel, axis=-1, keepdims=True).astype(jnp.float32)

        per_row = lse - label_logit                  # (TB, 1) f32
        if mask_rows:                                # only for a partial last tile
            row_ids = i * block_rows + jax.lax.broadcasted_iota(
                jnp.int32, (tb, 1), dimension=0)
            per_row = jnp.where(row_ids < batch_size, per_row, 0.0)

        tile_sum = jnp.sum(per_row, axis=0, keepdims=True)      # (1, 1)
        out_ref[...] = jnp.broadcast_to(tile_sum, (1, 128))     # lane-dense store

    return kernel


def ce_loss(inputs, labels, *, block_rows=None):
    """Mirrors CELoss.forward: inputs is a dict with 'features' and 'logits'."""
    logits = inputs["logits"]
    _ = inputs["features"]                           # unused by the reference forward
    batch_size, num_classes = logits.shape
    itemsize = jnp.dtype(logits.dtype).itemsize

    has_bf16_eup, ws_budget, vmem_cap = _tpu_config()
    if block_rows is None:
        block_rows = _pick_block_rows(batch_size, num_classes, itemsize, ws_budget)
    block_rows = int(block_rows)
    if block_rows >= batch_size:
        block_rows = batch_size
    else:
        block_rows = max(8, (block_rows // 8) * 8)

    num_tiles = pl.cdiv(batch_size, block_rows)
    padded_rows = num_tiles * block_rows

    labels2d = labels.astype(jnp.int32).reshape(batch_size, 1)
    if padded_rows != batch_size:
        labels2d = jnp.pad(labels2d, ((0, padded_rows - batch_size), (0, 0)))

    # Keep labels resident in VMEM (single DMA) unless the padded footprint
    # gets large; otherwise fall back to a small per-tile label DMA.
    labels_vmem_bytes = padded_rows * 512            # (N,1) i32 pads to (N,128) words
    labels_resident = labels_vmem_bytes <= (2 << 20)
    if labels_resident:
        labels_spec = pl.BlockSpec((padded_rows, 1), lambda i: (0, 0))
    else:
        labels_spec = pl.BlockSpec((block_rows, 1), lambda i: (i, 0))

    use_bf16_exp = has_bf16_eup and (logits.dtype == jnp.bfloat16)

    kernel = _make_ce_kernel(batch_size=batch_size, block_rows=block_rows,
                             labels_resident=labels_resident,
                             use_bf16_exp=use_bf16_exp)

    est_vmem = (2 * block_rows * num_classes * itemsize        # double-buffered tiles
                + 2 * block_rows * num_classes * 4             # f32 temporaries
                + (labels_vmem_bytes if labels_resident else 2 * block_rows * 512)
                + (2 << 20))                                   # headroom
    vmem_limit = int(min(vmem_cap, max(est_vmem, 16 << 20)))

    cost = pl.CostEstimate(
        flops=5 * batch_size * num_classes,
        transcendentals=batch_size * num_classes,
        bytes_accessed=(batch_size * num_classes * itemsize
                        + padded_rows * 4 + num_tiles * 128 * 4),
    )

    partials = pl.pallas_call(
        kernel,
        out_shape=jax.ShapeDtypeStruct((num_tiles, 128), jnp.float32),
        grid_spec=pltpu.PrefetchScalarGridSpec(
            num_scalar_prefetch=0,
            grid=(num_tiles,),
            in_specs=[
                pl.BlockSpec((block_rows, num_classes), lambda i: (i, 0)),
                labels_spec,
            ],
            out_specs=pl.BlockSpec((1, 128), lambda i: (i, 0)),
        ),
        compiler_params=pltpu.CompilerParams(
            dimension_semantics=("parallel",),       # no carried state -> both v7x TCs
            vmem_limit_bytes=vmem_limit,
        ),
        cost_estimate=cost,
    )(logits, labels2d)                              # native dtype, no HBM pre-cast

    # Tiny finalize outside the kernel: sum the per-tile partials, divide once.
    return jnp.sum(partials[:, 0]) / batch_size


def _reference(logits, labels):
    lp = jax.nn.log_softmax(logits.astype(jnp.float32), axis=-1)
    b = logits.shape[0]
    return -jnp.sum(lp[jnp.arange(b), labels]) / b


if __name__ == "__main__":
    key = jax.random.PRNGKey(0)
    keys = jax.random.split(key, 9)

    # --- Test 1: demo-sized, float32, single full-extent tile ---
    batch, feat_dim, class_num = 8, 32, 32
    features = jax.random.normal(keys[0], (batch, feat_dim), dtype=jnp.float32)
    logits = jax.random.normal(keys[1], (batch, class_num), dtype=jnp.float32)
    labels = jax.random.randint(keys[2], (batch,), 0, class_num, dtype=jnp.int32)

    loss = jax.block_until_ready(
        ce_loss({"features": features, "logits": logits}, labels))
    ref = _reference(logits, labels)
    assert jnp.allclose(loss, ref, atol=1e-5, rtol=1e-5), (loss, ref)

    # --- Test 2: native bf16 logits, 3 row tiles with a masked partial last tile ---
    batch2, class_num2 = 20, 256
    features2 = jax.random.normal(keys[3], (batch2, 64), dtype=jnp.bfloat16)
    logits2 = jax.random.normal(keys[4], (batch2, class_num2), dtype=jnp.bfloat16)
    labels2 = jax.random.randint(keys[5], (batch2,), 0, class_num2, dtype=jnp.int32)

    loss2 = jax.block_until_ready(
        ce_loss({"features": features2, "logits": logits2}, labels2, block_rows=8))
    ref2 = _reference(logits2, labels2)
    # Looser tolerance: on v6e/v7x the exp runs in bf16 (EUP throughput).
    assert jnp.allclose(loss2, ref2, atol=5e-3, rtol=5e-3), (loss2, ref2)

    # --- Test 3: float32, 4 full tiles (mask branch skipped at trace time) ---
    batch3, class_num3 = 64, 128
    features3 = jax.random.normal(keys[6], (batch3, 32), dtype=jnp.float32)
    logits3 = jax.random.normal(keys[7], (batch3, class_num3), dtype=jnp.float32)
    labels3 = jax.random.randint(keys[8], (batch3,), 0, class_num3, dtype=jnp.int32)

    loss3 = jax.block_until_ready(
        ce_loss({"features": features3, "logits": logits3}, labels3, block_rows=16))
    ref3 = _reference(logits3, labels3)
    assert jnp.allclose(loss3, ref3, atol=1e-5, rtol=1e-5), (loss3, ref3)

    print("KERNEL_OK")
</pallas_src>

<mosaic_0001>
module attributes {stable_mosaic.version = 11 : i64} {
  func.func @kernel(%arg0: i32, %arg1: memref<8x32xf32, #tpu.memory_space<vmem>>, %arg2: memref<8x1xi32, #tpu.memory_space<vmem>>, %arg3: memref<1x128xf32, #tpu.memory_space<vmem>>) attributes {dimension_semantics = [#tpu.dimension_semantics<parallel>], iteration_bounds = array<i64: 1>, scalar_prefetch = 0 : i64, scratch_operands = 0 : i64, tpu.core_type = #tpu.core_type<tc>, window_params = [{transform_indices = @transform_0, window_bounds = array<i64: 8, 32>}, {pipeline_mode = #tpu.pipeline_mode<synchronous>, transform_indices = @transform_1, window_bounds = array<i64: 8, 1>}, {transform_indices = @transform_2, window_bounds = array<i64: 1, 128>}]} {
    %c0 = arith.constant 0 : index
    %c0_0 = arith.constant 0 : index
    %0 = vector.load %arg1[%c0, %c0_0] : memref<8x32xf32, #tpu.memory_space<vmem>>, vector<8x32xf32>
    %c8_i32 = arith.constant 8 : i32
    %1 = arith.muli %arg0, %c8_i32 : i32
    %2 = tpu.assume_multiple %1, 8 : i32
    %3 = arith.index_cast %2 : i32 to index
    %c0_1 = arith.constant 0 : index
    %4 = vector.load %arg2[%3, %c0_1] : memref<8x1xi32, #tpu.memory_space<vmem>>, vector<8x1xi32>
    %cst = arith.constant dense<0xFF800000> : vector<8xf32>
    %5 = vector.multi_reduction <maximumf>, %0, %cst [1] : vector<8x32xf32> to vector<8xf32>
    %6 = vector.shape_cast %5 : vector<8xf32> to vector<8x1xf32>
    %7 = vector.broadcast %6 : vector<8x1xf32> to vector<8x32xf32>
    %8 = arith.subf %0, %7 : vector<8x32xf32>
    %9 = math.exp %8 : vector<8x32xf32>
    %cst_2 = arith.constant dense<0.000000e+00> : vector<8xf32>
    %10 = vector.multi_reduction <add>, %9, %cst_2 [1] : vector<8x32xf32> to vector<8xf32>
    %11 = vector.shape_cast %10 : vector<8xf32> to vector<8x1xf32>
    %12 = math.log %11 : vector<8x1xf32>
    %13 = arith.addf %6, %12 : vector<8x1xf32>
    %14 = tpu.iota {dimensions = array<i32: 1>} : vector<1x32xi32>
    %15 = vector.broadcast %14 : vector<1x32xi32> to vector<8x32xi32>
    %16 = vector.broadcast %4 : vector<8x1xi32> to vector<8x32xi32>
    %17 = arith.cmpi eq, %15, %16 : vector<8x32xi32>
    %cst_3 = arith.constant 0.000000e+00 : f32
    %18 = vector.broadcast %cst_3 : f32 to vector<8x32xf32>
    %19 = arith.select %17, %0, %18 : vector<8x32xi1>, vector<8x32xf32>
    %cst_4 = arith.constant dense<0.000000e+00> : vector<8xf32>
    %20 = vector.multi_reduction <add>, %19, %cst_4 [1] : vector<8x32xf32> to vector<8xf32>
    %21 = vector.shape_cast %20 : vector<8xf32> to vector<8x1xf32>
    %22 = arith.subf %13, %21 : vector<8x1xf32>
    %cst_5 = arith.constant dense<0.000000e+00> : vector<1xf32>
    %23 = vector.multi_reduction <add>, %22, %cst_5 [0] : vector<8x1xf32> to vector<1xf32>
    %24 = vector.shape_cast %23 : vector<1xf32> to vector<1x1xf32>
    %25 = vector.shape_cast %24 : vector<1x1xf32> to vector<1x1xf32>
    %26 = vector.broadcast %25 : vector<1x1xf32> to vector<1x128xf32>
    %c0_6 = arith.constant 0 : index
    %c0_7 = arith.constant 0 : index
    %27 = vector.load %arg3[%c0_6, %c0_7] : memref<1x128xf32, #tpu.memory_space<vmem>>, vector<1x128xf32>
    tpu.vector_store %arg3[%c0_6, %c0_7], %26 {strides = array<i32>} : memref<1x128xf32, #tpu.memory_space<vmem>>, vector<1x128xf32>,
    return
  }
  func.func @transform_0(%arg0: i32) -> (i32, i32) {
    %c0_i32 = arith.constant 0 : i32
    %c0_i32_0 = arith.constant 0 : i32
    return %arg0, %c0_i32 : i32, i32
  }
  func.func @transform_1(%arg0: i32) -> (i32, i32) {
    %c0_i32 = arith.constant 0 : i32
    %c0_i32_0 = arith.constant 0 : i32
    %c0_i32_1 = arith.constant 0 : i32
    return %c0_i32, %c0_i32_0 : i32, i32
  }
  func.func @transform_2(%arg0: i32) -> (i32, i32) {
    %c0_i32 = arith.constant 0 : i32
    %c0_i32_0 = arith.constant 0 : i32
    return %arg0, %c0_i32 : i32, i32
  }
}

</mosaic_0001>

<bundles_post_ra>
// kernel: tpu_custom_call.1
= control target key start
LH: loop header
LB: loop body
LE: loop exit
PB: predicated region body
PF: predicated region fallthrough
CT: control target
= control target key end

     0   :  { %vm16_vm0 = vcmask 261120   ;;  %s125_s0 = inlined_call_operand.vmem [shape: f32[8,32], index: 0, kind: input, shape index: {}]   ;;  %s126_s1 = inlined_call_operand.vmem [shape: s32[8,1], index: 1, kind: input, shape index: {}]   ;;  %s127_s2 = inlined_call_operand.hbm [shape: f32[1,128], index: 2, kind: output, shape index: {}]  }
   0x1   :  { %v12_v0 = vld [vmem:[%s125_s0] sm:$0xff] }
   0x2   :  { %7 = vsyncpa [#allocation3], 0  ;;  %v17_v1 = vsel %vm16_vm0, %v12_v0, -inf  ;;  %v96_v2 = vmov 0   ;;  %v15_v3 = vld [vmem:[%s126_s1] sm:$0xff]  ;;  %v29_v9 = vlaneseq  ;;  %s97_s0 = smov [#allocation2]  }
   0x3   :  { %65 = vset.pattern.permute.xlu0 %v96_v2  ;;  %s52_s1 = sshll.u32 %s97_s0, 4  ;;  %s54_s15 = sshll.u32 %s127_s2, 4  ;;  %s53_s1 = int_to_ptr.vmem [resolvable:$true] %s52_s1  ;;  %s55_s15 = int_to_ptr.hbm [resolvable:$true] %s54_s15 }
   0x4   :  { %18 = vmax.xlane.f32.xlu0 %v17_v1  ;;  %v30_v10 = vand.u32 127, %v29_v9 }
  0x18   :  { %32 = vperm.xlu0 %65, %v15_v3  }
  0x77   :  { %v19_v4 = vpop.xlane.xlu0 %18 }
  0x78   :  { %v20_v5 = vsub.f32 %v12_v0, %v19_v4 }
  0x7a   :  { %v21_v6 = vmul.f32 1.442695, %v20_v5 }
  0x7c   :  { %66 = vpow2.f32 %v21_v6 }
  0x82   :  { %v67_v7 = vpop.eup %66 }
  0x83   :  { %v23_v8 = vsel %vm16_vm0, %v67_v7, 0.0 }
  0x84   :  { %24 = vadd.xlane.f32.xlu1 %v23_v8 }
  0x8a   :  { %v33_v11 = vpop.permute.xlu0 %32 }
  0x8b   :  { %vm34_vm1 = vcmp.eq.s32.totalorder %v30_v10, %v33_v11 }
  0x8c   :  { %v35_v12 = vsel %vm34_vm1, %v12_v0, 0.0 }
  0x8d   :  { %v36_v13 = vsel %vm16_vm0, %v35_v12, 0.0 }
  0x8e   :  { %37 = vadd.xlane.f32.xlu1 %v36_v13 }
  0xf7   :  { %v25_v14 = vpop.xlane.xlu1 %24 }
  0xf8   :  { %68 = vlog2.f32 %v25_v14 }
  0xfe   :  { %v69_v15 = vpop.eup %68 }
  0xff   :  { %v27_v16 = vmul.f32 0.6931472, %v69_v15 }
 0x101   :  { %v28_v17 = vadd.f32 %v27_v16, %v19_v4  ;;  %v38_v18 = vpop.xlane.xlu1 %37 }
 0x103   :  { %v39_v19 = vsub.f32 %v28_v17, %v38_v18 }
 0x105   :  { %v40_v20 = vrot.slane %v39_v19, 4 }
 0x107   :  { %v41_v21 = vadd.f32 %v40_v20, %v39_v19 }
 0x109   :  { %v42_v22 = vrot.slane %v41_v21, 2 }
 0x10b   :  { %v43_v23 = vadd.f32 %v42_v22, %v41_v21 }
 0x10d   :  { %v44_v24 = vrot.slane %v43_v23, 1 }
 0x10f   :  { %v45_v25 = vadd.f32 %v44_v24, %v43_v23 }
 0x111   :  { %46 = vst [vmem:[#allocation2] sm:$0x1] %v45_v25 }
 0x112   :  { %57 = dma.vmem_to_hbm [thread:$0]  %s53_s1, 16, %s55_s15, [#allocation3]  }
 0x113   :  { %94 = dma.done.wait [#allocation3], 16  }
 0x114   :  { %95 = vsyncadd [#allocation3], 4294967280 }
 0x115   :  { %62 = vsyncpa [#allocation3], 1 }

</bundles_post_ra>
